<compile_context>
chip_gen: v6e
topology: v6e:2x2x1
jax: 0.10.0
libtpu: 0.0.40
codegen_flags: <defaults>
</compile_context>

<pallas_src>
import functools

import jax
import jax.numpy as jnp
from jax.experimental import pallas as pl
from jax.experimental.pallas import tpu as pltpu

LANE = 128                     # pad every feature dim to a multiple of 128 lanes
ROW_TILE_CAP = 1024            # max output-row tile of A_hat (safe on v7x 64 MiB VMEM)
COL_TILE_CAP = 2048            # max reduction tile of A_hat
SMALL_NP_CAP = 2048            # largest padded node count eligible for fused 3-layer path
SMALL_VMEM_BUDGET = 20 * 1024 * 1024


def _round_up(x, m):
    return ((x + m - 1) // m) * m


def _pad_to(arr, shape):
    return jnp.pad(arr, [(0, s - d) for d, s in zip(arr.shape, shape)])


def _largest_tile(n_p, cap):
    """Largest multiple of LANE that is <= cap and divides n_p."""
    t = min(cap, n_p)
    while n_p % t:
        t -= LANE
    return t


def _plan_nodes(n):
    """Padded node count: 128-aligned for small graphs, row-tile-aligned for big ones."""
    if n <= SMALL_NP_CAP:
        return _round_up(max(n, LANE), LANE)
    return _round_up(n, ROW_TILE_CAP)


# ----------------------------- kernels -----------------------------

def fused_gcn3_kernel(a_ref, x_ref, w1_ref, b1_ref, w2_ref, b2_ref, w3_ref, b3_ref,
                      out_ref):
    """Whole-graph 3-layer GCN: A, X and all weights resident in VMEM (small graphs)."""
    a = a_ref[...]

    def conv(h, w_ref, b_ref):
        xw = jnp.dot(h, w_ref[...], preferred_element_type=jnp.float32)
        return jnp.dot(a, xw.astype(jnp.bfloat16),
                       preferred_element_type=jnp.float32) + b_ref[...]

    h = jnp.maximum(conv(x_ref[...], w1_ref, b1_ref), 0.0).astype(jnp.bfloat16)
    # dropout(p=0.5, training=False) -> identity
    h = jnp.maximum(conv(h, w2_ref, b2_ref), 0.0).astype(jnp.bfloat16)
    # dropout(p=0.5, training=False) -> identity
    out_ref[...] = conv(h, w3_ref, b3_ref).astype(out_ref.dtype)


def fused_conv_kernel(a_ref, h_ref, w_ref, b_ref, out_ref, acc_ref, *, relu):
    """out_rowtile = A_rowtile @ (H_ktile @ W) + b (+ReLU), accumulated over K tiles.

    Fusing the dense transform into the K loop keeps W resident in VMEM and removes
    the XW HBM round-trip; the recomputed H@W FLOPs hide under the A DMA (mem-bound).
    """
    k = pl.program_id(1)

    @pl.when(k == 0)
    def _():
        acc_ref[...] = jnp.zeros_like(acc_ref)

    xw = jnp.dot(h_ref[...], w_ref[...], preferred_element_type=jnp.float32)
    acc_ref[...] += jnp.dot(a_ref[...], xw.astype(jnp.bfloat16),
                            preferred_element_type=jnp.float32)

    @pl.when(k == pl.num_programs(1) - 1)
    def _():
        r = acc_ref[...] + b_ref[...]          # bias + ReLU stay in f32 on the VPU
        if relu:
            r = jnp.maximum(r, 0.0)
        out_ref[...] = r.astype(out_ref.dtype)


# --------------------------- pallas_call wrappers ---------------------------

def _fused3(a_p, x_p, pparams, out_dtype):
    n_p = a_p.shape[0]
    w1p, b1p, w2p, b2p, w3p, b3p = pparams
    dims = [(x_p.shape[1], w1p.shape[1]),
            (w1p.shape[1], w2p.shape[1]),
            (w2p.shape[1], w3p.shape[1])]
    fout_p = w3p.shape[1]
    cost = pl.CostEstimate(
        flops=sum(2 * n_p * fi * fo + 2 * n_p * n_p * fo for fi, fo in dims),
        transcendentals=0,
        bytes_accessed=(2 * n_p * n_p + 2 * n_p * x_p.shape[1]
                        + sum(2 * fi * fo for fi, fo in dims)
                        + 4 * n_p * fout_p),
    )
    return pl.pallas_call(
        fused_gcn3_kernel,
        out_shape=jax.ShapeDtypeStruct((n_p, fout_p), out_dtype),
        compiler_params=pltpu.CompilerParams(vmem_limit_bytes=32 * 1024 * 1024),
        cost_estimate=cost,
    )(a_p, x_p, w1p, b1p, w2p, b2p, w3p, b3p)


def _tiled_conv(a_p, h_p, w_p, b_p, *, relu, out_dtype):
    n_p = a_p.shape[0]
    fin_p = h_p.shape[1]
    fout_p = w_p.shape[1]
    tm = _largest_tile(n_p, ROW_TILE_CAP)
    tk = _largest_tile(n_p, COL_TILE_CAP)
    rows, ks = n_p // tm, n_p // tk
    cost = pl.CostEstimate(
        flops=2 * n_p * n_p * fout_p + 2 * rows * n_p * fin_p * fout_p,
        transcendentals=0,
        bytes_accessed=(2 * n_p * n_p                          # A (bf16), dominant stream
                        + 2 * rows * n_p * fin_p               # H re-read once per row tile
                        + 2 * fin_p * fout_p                   # W (resident)
                        + jnp.dtype(out_dtype).itemsize * n_p * fout_p),
    )
    return pl.pallas_call(
        functools.partial(fused_conv_kernel, relu=relu),
        out_shape=jax.ShapeDtypeStruct((n_p, fout_p), out_dtype),
        grid=(rows, ks),
        in_specs=[
            pl.BlockSpec((tm, tk), lambda i, k: (i, k)),
            pl.BlockSpec((tk, fin_p), lambda i, k: (k, 0)),
            pl.BlockSpec((fin_p, fout_p), lambda i, k: (0, 0)),
            pl.BlockSpec((1, fout_p), lambda i, k: (0, 0)),
        ],
        out_specs=pl.BlockSpec((tm, fout_p), lambda i, k: (i, 0)),
        scratch_shapes=[pltpu.VMEM((tm, fout_p), jnp.float32)],
        compiler_params=pltpu.CompilerParams(
            dimension_semantics=("parallel", "arbitrary"),
            vmem_limit_bytes=48 * 1024 * 1024,   # fits v7x's 64 MiB VMEM per TensorCore
        ),
        cost_estimate=cost,
    )(a_p, h_p, w_p, b_p)


def _small_path_ok(n_p, fin_p, f1_p, f2_p, f3_p):
    if n_p > SMALL_NP_CAP:
        return False
    fmax = max(fin_p, f1_p, f2_p, f3_p)
    est = (2 * n_p * n_p                                   # A (bf16)
           + 2 * n_p * fin_p                               # X (bf16)
           + 10 * n_p * fmax                               # live activations / f32 temps
           + 2 * (fin_p * f1_p + f1_p * f2_p + f2_p * f3_p)  # weights (bf16)
           + 4 * n_p * f3_p)                               # f32 output
    return est <= SMALL_VMEM_BUDGET


# --------------------------- glue (plain JAX) ---------------------------

def normalized_adjacency(edge_index, num_nodes):
    """Dense A_hat = D^-1/2 (A + I) D^-1/2, PyG gcn_norm semantics."""
    src = edge_index[0]
    dst = edge_index[1]
    loop = jnp.arange(num_nodes, dtype=edge_index.dtype)
    src = jnp.concatenate([src, loop])
    dst = jnp.concatenate([dst, loop])
    a = jnp.zeros((num_nodes, num_nodes), jnp.float32).at[dst, src].add(1.0)
    deg = a.sum(axis=1)
    d_inv_sqrt = jnp.where(deg > 0, jax.lax.rsqrt(deg), 0.0)
    return d_inv_sqrt[:, None] * a * d_inv_sqrt[None, :]


def prepare_graph(edge_index, num_nodes):
    """Build, pad and bf16-cast A_hat ONCE per static graph (hoisted out of the hot path)."""
    a_hat = normalized_adjacency(edge_index, num_nodes)
    n_p = _plan_nodes(num_nodes)
    return _pad_to(a_hat, (n_p, n_p)).astype(jnp.bfloat16)


def prepare_params(params):
    """Zero-pad every GCNConv layer to 128-lane dims; bf16 weights, f32 (1, C) biases."""
    w1, b1, w2, b2, w3, b3 = params
    out = []
    for w, b in ((w1, b1), (w2, b2), (w3, b3)):
        fin_p = _round_up(w.shape[0], LANE)
        fout_p = _round_up(w.shape[1], LANE)
        out.append(_pad_to(w.astype(jnp.float32), (fin_p, fout_p)).astype(jnp.bfloat16))
        out.append(_pad_to(b.astype(jnp.float32).reshape(1, -1), (1, fout_p)))
    return tuple(out)


@functools.partial(jax.jit, static_argnames=("n", "num_classes"))
def gcn_forward(x, a_p, pparams, *, n, num_classes):
    """x: [N, F] f32; a_p: padded bf16 A_hat (prepare_graph); pparams: prepare_params()."""
    n_p = a_p.shape[0]
    fin_p = _round_up(x.shape[1], LANE)
    x_p = _pad_to(x.astype(jnp.float32), (n_p, fin_p)).astype(jnp.bfloat16)
    w1p, b1p, w2p, b2p, w3p, b3p = pparams

    if _small_path_ok(n_p, fin_p, w1p.shape[1], w2p.shape[1], w3p.shape[1]):
        out = _fused3(a_p, x_p, pparams, jnp.float32)
    else:
        h = _tiled_conv(a_p, x_p, w1p, b1p, relu=True, out_dtype=jnp.bfloat16)
        # dropout(p=0.5, training=False) -> identity
        h = _tiled_conv(a_p, h, w2p, b2p, relu=True, out_dtype=jnp.bfloat16)
        # dropout(p=0.5, training=False) -> identity
        out = _tiled_conv(a_p, h, w3p, b3p, relu=False, out_dtype=jnp.float32)

    return out[:n, :num_classes]


def init_params(key, input_features, hidden_channels, output_classes):
    """Deterministic glorot-uniform weights + zero biases (GCNConv layout: [in, out])."""
    dims = [(input_features, hidden_channels),
            (hidden_channels, hidden_channels // 2),
            (hidden_channels // 2, output_classes)]
    params = []
    for (fin, fout) in dims:
        key, sub = jax.random.split(key)
        limit = jnp.sqrt(6.0 / (fin + fout))
        w = jax.random.uniform(sub, (fin, fout), jnp.float32, -limit, limit)
        b = jnp.zeros((fout,), jnp.float32)
        params.extend([w, b])
    return tuple(params)


if __name__ == "__main__":
    key = jax.random.PRNGKey(0)
    num_nodes = 32
    num_edges = 64
    input_features = 16
    hidden_channels = 32
    output_classes = 8

    k_x, k_e, k_p = jax.random.split(key, 3)
    x = jax.random.normal(k_x, (num_nodes, input_features), jnp.float32)
    edge_index = jax.random.randint(k_e, (2, num_edges), 0, num_nodes, jnp.int32)
    params = init_params(k_p, input_features, hidden_channels, output_classes)

    # Per-graph / per-model prep done once (hoisted out of the per-call hot path).
    a_p = jax.block_until_ready(prepare_graph(edge_index, num_nodes))
    pparams = prepare_params(params)

    out = gcn_forward(x, a_p, pparams, n=num_nodes, num_classes=output_classes)
    jax.block_until_ready(out)
    assert out.shape == (num_nodes, output_classes)
    assert bool(jnp.all(jnp.isfinite(out)))
    print("KERNEL_OK")
</pallas_src>

<mosaic_0001>
module attributes {stable_mosaic.version = 11 : i64} {
  func.func @fused_gcn3_kernel(%arg0: memref<128x128xbf16, #tpu.memory_space<vmem>>, %arg1: memref<128x128xbf16, #tpu.memory_space<vmem>>, %arg2: memref<128x128xbf16, #tpu.memory_space<vmem>>, %arg3: memref<1x128xf32, #tpu.memory_space<vmem>>, %arg4: memref<128x128xbf16, #tpu.memory_space<vmem>>, %arg5: memref<1x128xf32, #tpu.memory_space<vmem>>, %arg6: memref<128x128xbf16, #tpu.memory_space<vmem>>, %arg7: memref<1x128xf32, #tpu.memory_space<vmem>>, %arg8: memref<128x128xf32, #tpu.memory_space<vmem>>) attributes {dimension_semantics = [], scalar_prefetch = 0 : i64, scratch_operands = 0 : i64, tpu.core_type = #tpu.core_type<tc>} {
    %c0 = arith.constant 0 : index
    %c0_0 = arith.constant 0 : index
    %0 = vector.load %arg0[%c0, %c0_0] : memref<128x128xbf16, #tpu.memory_space<vmem>>, vector<128x128xbf16>
    %c0_1 = arith.constant 0 : index
    %c0_2 = arith.constant 0 : index
    %1 = vector.load %arg1[%c0_1, %c0_2] : memref<128x128xbf16, #tpu.memory_space<vmem>>, vector<128x128xbf16>
    %c0_3 = arith.constant 0 : index
    %c0_4 = arith.constant 0 : index
    %2 = vector.load %arg2[%c0_3, %c0_4] : memref<128x128xbf16, #tpu.memory_space<vmem>>, vector<128x128xbf16>
    %cst = arith.constant dense<0.000000e+00> : vector<128x128xf32>
    %3 = tpu.matmul %1, %2, %cst {dimension_numbers = #tpu.dot_dimension_numbers<[1], [0], [0], [1], [0, 0, 1, 1], [], []>} : vector<128x128xbf16>, vector<128x128xbf16>, vector<128x128xf32> -> vector<128x128xf32>
    %4 = arith.truncf %3 : vector<128x128xf32> to vector<128x128xbf16>
    %cst_5 = arith.constant dense<0.000000e+00> : vector<128x128xf32>
    %5 = tpu.matmul %0, %4, %cst_5 {dimension_numbers = #tpu.dot_dimension_numbers<[1], [0], [0], [1], [0, 0, 1, 1], [], []>} : vector<128x128xbf16>, vector<128x128xbf16>, vector<128x128xf32> -> vector<128x128xf32>
    %c0_6 = arith.constant 0 : index
    %c0_7 = arith.constant 0 : index
    %6 = vector.load %arg3[%c0_6, %c0_7] : memref<1x128xf32, #tpu.memory_space<vmem>>, vector<1x128xf32>
    %7 = vector.broadcast %6 : vector<1x128xf32> to vector<128x128xf32>
    %8 = arith.addf %5, %7 : vector<128x128xf32>
    %cst_8 = arith.constant 0.000000e+00 : f32
    %9 = vector.broadcast %cst_8 : f32 to vector<128x128xf32>
    %10 = arith.maximumf %8, %9 : vector<128x128xf32>
    %11 = arith.truncf %10 : vector<128x128xf32> to vector<128x128xbf16>
    %c0_9 = arith.constant 0 : index
    %c0_10 = arith.constant 0 : index
    %12 = vector.load %arg4[%c0_9, %c0_10] : memref<128x128xbf16, #tpu.memory_space<vmem>>, vector<128x128xbf16>
    %cst_11 = arith.constant dense<0.000000e+00> : vector<128x128xf32>
    %13 = tpu.matmul %11, %12, %cst_11 {dimension_numbers = #tpu.dot_dimension_numbers<[1], [0], [0], [1], [0, 0, 1, 1], [], []>} : vector<128x128xbf16>, vector<128x128xbf16>, vector<128x128xf32> -> vector<128x128xf32>
    %14 = arith.truncf %13 : vector<128x128xf32> to vector<128x128xbf16>
    %cst_12 = arith.constant dense<0.000000e+00> : vector<128x128xf32>
    %15 = tpu.matmul %0, %14, %cst_12 {dimension_numbers = #tpu.dot_dimension_numbers<[1], [0], [0], [1], [0, 0, 1, 1], [], []>} : vector<128x128xbf16>, vector<128x128xbf16>, vector<128x128xf32> -> vector<128x128xf32>
    %c0_13 = arith.constant 0 : index
    %c0_14 = arith.constant 0 : index
    %16 = vector.load %arg5[%c0_13, %c0_14] : memref<1x128xf32, #tpu.memory_space<vmem>>, vector<1x128xf32>
    %17 = vector.broadcast %16 : vector<1x128xf32> to vector<128x128xf32>
    %18 = arith.addf %15, %17 : vector<128x128xf32>
    %cst_15 = arith.constant 0.000000e+00 : f32
    %19 = vector.broadcast %cst_15 : f32 to vector<128x128xf32>
    %20 = arith.maximumf %18, %19 : vector<128x128xf32>
    %21 = arith.truncf %20 : vector<128x128xf32> to vector<128x128xbf16>
    %c0_16 = arith.constant 0 : index
    %c0_17 = arith.constant 0 : index
    %22 = vector.load %arg6[%c0_16, %c0_17] : memref<128x128xbf16, #tpu.memory_space<vmem>>, vector<128x128xbf16>
    %cst_18 = arith.constant dense<0.000000e+00> : vector<128x128xf32>
    %23 = tpu.matmul %21, %22, %cst_18 {dimension_numbers = #tpu.dot_dimension_numbers<[1], [0], [0], [1], [0, 0, 1, 1], [], []>} : vector<128x128xbf16>, vector<128x128xbf16>, vector<128x128xf32> -> vector<128x128xf32>
    %24 = arith.truncf %23 : vector<128x128xf32> to vector<128x128xbf16>
    %cst_19 = arith.constant dense<0.000000e+00> : vector<128x128xf32>
    %25 = tpu.matmul %0, %24, %cst_19 {dimension_numbers = #tpu.dot_dimension_numbers<[1], [0], [0], [1], [0, 0, 1, 1], [], []>} : vector<128x128xbf16>, vector<128x128xbf16>, vector<128x128xf32> -> vector<128x128xf32>
    %c0_20 = arith.constant 0 : index
    %c0_21 = arith.constant 0 : index
    %26 = vector.load %arg7[%c0_20, %c0_21] : memref<1x128xf32, #tpu.memory_space<vmem>>, vector<1x128xf32>
    %27 = vector.broadcast %26 : vector<1x128xf32> to vector<128x128xf32>
    %28 = arith.addf %25, %27 : vector<128x128xf32>
    %c0_22 = arith.constant 0 : index
    %c0_23 = arith.constant 0 : index
    %29 = vector.load %arg8[%c0_22, %c0_23] : memref<128x128xf32, #tpu.memory_space<vmem>>, vector<128x128xf32>
    tpu.vector_store %arg8[%c0_22, %c0_23], %28 {strides = array<i32>} : memref<128x128xf32, #tpu.memory_space<vmem>>, vector<128x128xf32>,
    return
  }
}

</mosaic_0001>

<bundles_post_ra>
// kernel: gcn_forward.1
= control target key start
LH: loop header
LB: loop body
LE: loop exit
PB: predicated region body
PF: predicated region fallthrough
CT: control target
= control target key end

     0   :  { %13 = vsyncpa [#allocation3], 0  ;;  %s1718_s0 = inlined_call_operand.vmem [shape: bf16[128,128], index: 0, kind: input, shape index: {}]   ;;  %s1719_s1 = inlined_call_operand.vmem [shape: bf16[128,128], index: 1, kind: input, shape index: {}]   ;;  %s1720_s2 = inlined_call_operand.vmem [shape: bf16[128,128], index: 2, kind: input, shape index: {}]   ;;  %s1721_s3 = inlined_call_operand.vmem [shape: f32[1,128], index: 3, kind: input, shape index: {}]   ;;  %s1722_s4 = inlined_call_operand.hbm [shape: bf16[128,128], index: 4, kind: input, shape index: {}]   ;;  %s1723_s5 = inlined_call_operand.vmem [shape: f32[1,128], index: 5, kind: input, shape index: {}]   ;;  %s1724_s6 = inlined_call_operand.hbm [shape: bf16[128,128], index: 6, kind: input, shape index: {}]   ;;  %s1725_s7 = inlined_call_operand.vmem [shape: f32[1,128], index: 7, kind: input, shape index: {}]   ;;  %s1726_s8 = inlined_call_operand.vmem [shape: f32[128,128], index: 8, kind: output, shape index: {}]  }
   0x1   :  { %14 = vsyncpa [#allocation5], 0  ;;  %s1494_s27 = smov [#allocation2]  }
   0x2   :  { %s28_s28 = sshll.u32 %s1494_s27, 4  ;;  %s29_s28 = int_to_ptr.vmem [resolvable:$true] %s28_s28 }
   0x3   :  { %s1458_s29 = scalar_lea.vmem %s29_s28, 1024  ;;  %p1463_p1 = scmp.lt.s32.totalorder %s29_s28, %s29_s28 }
   0x4   :  { %p1459_p0 = scmp.ne.s32.totalorder %s29_s28, %s1458_s29  ;;  %p1464_p2 = scmp.lt.s32.totalorder %s1458_s29, %s1458_s29 }
   0x6   :  { %p1465_p3 = por %p1464_p2, %p1463_p1 }
   0x8   :  { %p1466_p4 = pnand %p1465_p3, %p1459_p0 }
   0xa   :  { %1469 = shalt.err (!%p1466_p4)
}
   0xb   :  { %s1495_s30 = smov 64   ;;  %s1496_s9 = smov 4  }
   0xc   :  { %34 = dma.hbm_to_vmem [thread:$0]  %s1722_s4, 1024, %s29_s28, [#allocation3], %s1495_s30, %s1495_s30, %s1496_s9  }
   0xd   :  { %s1497_s12 = smov [#allocation4]  }
   0xe   :  { %s42_s13 = sshll.u32 %s1497_s12, 4  ;;  %s43_s13 = int_to_ptr.vmem [resolvable:$true] %s42_s13 }
   0xf   :  { %s1478_s14 = scalar_lea.vmem %s43_s13, 1024  ;;  %p1483_p6 = scmp.lt.s32.totalorder %s43_s13, %s43_s13 }
  0x10   :  { %p1479_p5 = scmp.ne.s32.totalorder %s43_s13, %s1478_s14  ;;  %p1484_p7 = scmp.lt.s32.totalorder %s1478_s14, %s1478_s14 }
  0x12   :  { %p1485_p8 = por %p1484_p7, %p1483_p6 }
  0x14   :  { %p1486_p9 = pnand %p1485_p8, %p1479_p5 }
  0x16   :  { %1489 = shalt.err (!%p1486_p9)
}
  0x17   :  { %48 = dma.hbm_to_vmem [thread:$0]  %s1724_s6, 1024, %s43_s13, [#allocation5], %s1495_s30, %s1495_s30, %s1496_s9  }
  0x18   :  { %1490 = dma.done.wait [#allocation3], 1024  }
  0x19   :  { %1491 = vsyncadd [#allocation3], 4294966272 }
  0x1a   :  { %1492 = dma.done.wait [#allocation5], 1024  }
  0x1b   :  { %1493 = vsyncadd [#allocation5], 4294966272  ;;  %v1410_v0 = vld [vmem:[%s1720_s2 + $0x38] sm:$0xff]   ;;  %v1411_v1 = vld [vmem:[%s1720_s2 + $0x30] sm:$0xff]  }
  0x1c   :  { %1214 = vmatprep.subr.bf16.mxu0 %v1410_v0  ;;  %v1412_v2 = vld [vmem:[%s1720_s2 + $0x28] sm:$0xff]   ;;  %v1413_v3 = vld [vmem:[%s1720_s2 + $0x20] sm:$0xff]   ;;  %v1414_v5 = vld [vmem:[%s1720_s2 + $0x18] sm:$0xff]  }
  0x1d   :  { %1215 = vmatpush3.bf16.msra.mxu0 %v1410_v0  ;;  %v1418_v4 = vld [vmem:[%s1719_s1] sm:$0xff]   ;;  %v1415_v6 = vld [vmem:[%s1720_s2 + $0x10] sm:$0xff]   ;;  %v1416_v7 = vld [vmem:[%s1720_s2 + $0x8] sm:$0xff]  }
  0x1e   :  { %1216 = vmatprep.subr.bf16.mxu0 %v1411_v1  ;;  %1230 = vmatprep.mubr.bf16.mxu0 %v1418_v4  ;;  %v1417_v8 = vld [vmem:[%s1720_s2] sm:$0xff]   ;;  %v1419_v9 = vld [vmem:[%s1719_s1 + $0x8] sm:$0xff]   ;;  %v1420_v10 = vld [vmem:[%s1719_s1 + $0x10] sm:$0xff]  }
  0x1f   :  { %v1421_v11 = vld [vmem:[%s1719_s1 + $0x18] sm:$0xff]   ;;  %v1422_v12 = vld [vmem:[%s1719_s1 + $0x20] sm:$0xff]   ;;  %v1423_v13 = vld [vmem:[%s1719_s1 + $0x28] sm:$0xff]  }
  0x20   :  { %v1424_v14 = vld [vmem:[%s1719_s1 + $0x30] sm:$0xff]   ;;  %v1425_v15 = vld [vmem:[%s1719_s1 + $0x38] sm:$0xff]   ;;  %v1600_v16 = vld [vmem:[%s1718_s0] sm:$0xff]  }
  0x21   :  { %1217 = vmatpush3.bf16.msra.mxu0 %v1411_v1  ;;  %1262 = vmatprep.mubr.bf16.mxu1 %v1600_v16  ;;  %v1434_v17 = vld [vmem:[#allocation2 + $0x38] sm:$0xff]   ;;  %v1435_v18 = vld [vmem:[#allocation2 + $0x30] sm:$0xff]   ;;  %v1436_v19 = vld [vmem:[#allocation2 + $0x28] sm:$0xff]  }
  0x22   :  { %1218 = vmatprep.subr.bf16.mxu0 %v1412_v2  ;;  %v1437_v20 = vld [vmem:[#allocation2 + $0x20] sm:$0xff]   ;;  %v1438_v21 = vld [vmem:[#allocation2 + $0x18] sm:$0xff]   ;;  %v1606_v46 = vld [vmem:[%s1718_s0 + $0x8] sm:$0xff]  }
  0x23   :  { %v1611_v47 = vld [vmem:[%s1718_s0 + $0x10] sm:$0xff]   ;;  %v1618_v48 = vld [vmem:[%s1718_s0 + $0x18] sm:$0xff]   ;;  %v1623_v49 = vld [vmem:[%s1718_s0 + $0x20] sm:$0xff]  }
  0x24   :  { %v1630_v50 = vld [vmem:[%s1718_s0 + $0x28] sm:$0xff]   ;;  %v1635_v51 = vld [vmem:[%s1718_s0 + $0x30] sm:$0xff]   ;;  %v1642_v52 = vld [vmem:[%s1718_s0 + $0x38] sm:$0xff]  }
  0x25   :  { %1219 = vmatpush3.bf16.msra.mxu0 %v1412_v2  ;;  %v1439_v53 = vld [vmem:[#allocation2 + $0x10] sm:$0xff]   ;;  %v1440_v54 = vld [vmem:[#allocation2 + $0x8] sm:$0xff]   ;;  %v1441_v55 = vld [vmem:[#allocation2] sm:$0xff]  }
  0x26   :  { %1220 = vmatprep.subr.bf16.mxu0 %v1413_v3  ;;  %v1091_v58 = vld [vmem:[%s1721_s3] ss:$0 sm:$0xff] }
  0x29   :  { %1221 = vmatpush3.bf16.msra.mxu0 %v1413_v3 }
  0x2a   :  { %1222 = vmatprep.subr.bf16.mxu0 %v1414_v5 }
  0x2d   :  { %1223 = vmatpush3.bf16.msra.mxu0 %v1414_v5 }
  0x2e   :  { %1224 = vmatprep.subr.bf16.mxu0 %v1415_v6 }
  0x31   :  { %1225 = vmatpush3.bf16.msra.mxu0 %v1415_v6 }
  0x32   :  { %1226 = vmatprep.subr.bf16.mxu0 %v1416_v7 }
  0x35   :  { %1227 = vmatpush3.bf16.msra.mxu0 %v1416_v7 }
  0x36   :  { %1228 = vmatprep.subr.bf16.mxu0 %v1417_v8 }
  0x39   :  { %1229 = vmatpush3.bf16.msra.mxu0 %v1417_v8 }
  0x3a   :  { %1278 = vmatprep.subr.bf16.mxu0 %v1434_v17 }
  0x3c   :  { %1231 = vmatmul.mubr.bf16.vlgmr.msra.gmra.mxu0 %v1419_v9 }
  0x3d   :  { %1234 = vmatprep.mubr.bf16.mxu0 %v1420_v10  ;;  %1279 = vmatpush3.bf16.msra.mxu0 %v1434_v17 }
  0x3e   :  { %1280 = vmatprep.subr.bf16.mxu0 %v1435_v18 }
  0x41   :  { %1281 = vmatpush3.bf16.msra.mxu0 %v1435_v18 }
  0x42   :  { %1282 = vmatprep.subr.bf16.mxu0 %v1436_v19 }
  0x44   :  { %1235 = vmatmul.mubr.bf16.gmra.mxu0 %v1421_v11 }
  0x45   :  { %1238 = vmatprep.mubr.bf16.mxu0 %v1422_v12  ;;  %1283 = vmatpush3.bf16.msra.mxu0 %v1436_v19 }
  0x46   :  { %1284 = vmatprep.subr.bf16.mxu0 %v1437_v20 }
  0x49   :  { %1285 = vmatpush3.bf16.msra.mxu0 %v1437_v20 }
  0x4a   :  { %1286 = vmatprep.subr.bf16.mxu0 %v1438_v21 }
  0x4c   :  { %1239 = vmatmul.mubr.bf16.gmra.mxu0 %v1423_v13 }
  0x4d   :  { %1242 = vmatprep.mubr.bf16.mxu0 %v1424_v14  ;;  %1287 = vmatpush3.bf16.msra.mxu0 %v1438_v21 }
  0x4e   :  { %1288 = vmatprep.subr.bf16.mxu0 %v1439_v53 }
  0x51   :  { %1289 = vmatpush3.bf16.msra.mxu0 %v1439_v53 }
  0x52   :  { %1290 = vmatprep.subr.bf16.mxu0 %v1440_v54 }
  0x54   :  { %1243 = vmatmul.mubr.bf16.gmra.mxu0 %v1425_v15 }
  0x55   :  { %1291 = vmatpush3.bf16.msra.mxu0 %v1440_v54 }
  0x56   :  { %1292 = vmatprep.subr.bf16.mxu0 %v1441_v55 }
  0x59   :  { %1293 = vmatpush3.bf16.msra.mxu0 %v1441_v55 }
  0xfc   :  { %v1232_v22 = vpop.f32.mrf.mxu0 }
  0xfe   :  { %v236_v23 = vpop.f32.mrf.mxu0 }
 0x100   :  { %v1233_v24 = vpop.f32.mrf.mxu0 }
 0x101   :  { %v300_v44 = vpack.c.bf16 %v1233_v24, %v1232_v22 }
 0x102   :  { %v239_v25 = vpop.f32.mrf.mxu0 }
 0x103   :  { %v299_v45 = vpack.c.bf16 %v239_v25, %v236_v23 }
 0x104   :  { %v1236_v26 = vpop.f32.mrf.mxu0 }
 0x106   :  { %v252_v27 = vpop.f32.mrf.mxu0 }
 0x108   :  { %v1237_v28 = vpop.f32.mrf.mxu0 }
 0x109   :  { %v302_v42 = vpack.c.bf16 %v1237_v28, %v1236_v26 }
 0x10a   :  { %v255_v29 = vpop.f32.mrf.mxu0 }
 0x10b   :  { %v301_v43 = vpack.c.bf16 %v255_v29, %v252_v27 }
 0x10c   :  { %v1240_v30 = vpop.f32.mrf.mxu0 }
 0x10e   :  { %v268_v31 = vpop.f32.mrf.mxu0 }
 0x110   :  { %v1241_v32 = vpop.f32.mrf.mxu0 }
 0x111   :  { %v304_v40 = vpack.c.bf16 %v1241_v32, %v1240_v30 }
 0x112   :  { %v271_v33 = vpop.f32.mrf.mxu0 }
 0x113   :  { %v303_v41 = vpack.c.bf16 %v271_v33, %v268_v31 }
 0x114   :  { %v1244_v34 = vpop.f32.mrf.mxu0 }
 0x116   :  { %v284_v35 = vpop.f32.mrf.mxu0 }
 0x118   :  { %v1245_v36 = vpop.f32.mrf.mxu0 }
 0x119   :  { %v306_v37 = vpack.c.bf16 %v1245_v36, %v1244_v34 }
 0x11a   :  { %v287_v38 = vpop.f32.mrf.mxu0 }
 0x11b   :  { %v305_v39 = vpack.c.bf16 %v287_v38, %v284_v35  ;;  %1246 = vmatprep.subr.bf16.mxu1 %v306_v37 }
 0x11c   :  { %1247 = vmatpush3.bf16.msra.mxu1 %v306_v37 }
 0x11d   :  { %1248 = vmatprep.subr.bf16.mxu1 %v305_v39 }
 0x120   :  { %1249 = vmatpush3.bf16.msra.mxu1 %v305_v39 }
 0x121   :  { %1250 = vmatprep.subr.bf16.mxu1 %v304_v40 }
 0x124   :  { %1251 = vmatpush3.bf16.msra.mxu1 %v304_v40 }
 0x125   :  { %1252 = vmatprep.subr.bf16.mxu1 %v303_v41 }
 0x128   :  { %1253 = vmatpush3.bf16.msra.mxu1 %v303_v41 }
 0x129   :  { %1254 = vmatprep.subr.bf16.mxu1 %v302_v42 }
 0x12c   :  { %1255 = vmatpush3.bf16.msra.mxu1 %v302_v42 }
 0x12d   :  { %1256 = vmatprep.subr.bf16.mxu1 %v301_v43 }
 0x130   :  { %1257 = vmatpush3.bf16.msra.mxu1 %v301_v43 }
 0x131   :  { %1258 = vmatprep.subr.bf16.mxu1 %v300_v44 }
 0x134   :  { %1259 = vmatpush3.bf16.msra.mxu1 %v300_v44 }
 0x135   :  { %1260 = vmatprep.subr.bf16.mxu1 %v299_v45 }
 0x138   :  { %1261 = vmatpush3.bf16.msra.mxu1 %v299_v45 }
 0x13b   :  { %1263 = vmatmul.mubr.bf16.vlgmr.msra.gmra.mxu1 %v1606_v46 }
 0x13c   :  { %1266 = vmatprep.mubr.bf16.mxu1 %v1611_v47 }
 0x143   :  { %1267 = vmatmul.mubr.bf16.gmra.mxu1 %v1618_v48 }
 0x144   :  { %1270 = vmatprep.mubr.bf16.mxu1 %v1623_v49 }
 0x14b   :  { %1271 = vmatmul.mubr.bf16.gmra.mxu1 %v1630_v50 }
 0x14c   :  { %1274 = vmatprep.mubr.bf16.mxu1 %v1635_v51 }
 0x153   :  { %1275 = vmatmul.mubr.bf16.gmra.mxu1 %v1642_v52 }
 0x154   :  { %1326 = vmatprep.mubr.bf16.mxu1 %v1600_v16 }
 0x1fb   :  { %v1264_v56 = vpop.f32.mrf.mxu1 }
 0x1fc   :  { %v405_v62 = vadd.f32 %v1264_v56, %v1091_v58 }
 0x1fd   :  { %v396_v57 = vpop.f32.mrf.mxu1 }
 0x1fe   :  { %v397_v60 = vadd.f32 %v1091_v58, %v396_v57  ;;  %v461_v5 = vmax.f32 %v405_v62, 0.0  ;;  %v1442_v57 = vld [vmem:[#allocation4 + $0x38] sm:$0xff]  }
 0x1ff   :  { %v1265_v59 = vpop.f32.mrf.mxu1  ;;  %1342 = vmatprep.subr.bf16.mxu0 %v1442_v57 }
 0x200   :  { %v408_v61 = vadd.f32 %v1265_v59, %v1091_v58  ;;  %v459_v3 = vmax.f32 %v397_v60, 0.0  ;;  %v1443_v59 = vld [vmem:[#allocation4 + $0x30] sm:$0xff]   ;;  %v1444_v60 = vld [vmem:[#allocation4 + $0x28] sm:$0xff]  }
 0x201   :  { %v399_v63 = vpop.f32.mrf.mxu1 }
 0x202   :  { %v400_v0 = vadd.f32 %v1091_v58, %v399_v63  ;;  %v462_v1 = vmax.f32 %v408_v61, 0.0  ;;  %v1445_v61 = vld [vmem:[#allocation4 + $0x20] sm:$0xff]  }
 0x203   :  { %v1268_v2 = vpop.f32.mrf.mxu1 }
 0x204   :  { %v460_v4 = vmax.f32 %v400_v0, 0.0  ;;  %v476_v8 = vpack.c.bf16 %v462_v1, %v461_v5  ;;  %v421_v12 = vadd.f32 %v1268_v2, %v1091_v58 }
 0x205   :  { %v412_v6 = vpop.f32.mrf.mxu1 }
 0x206   :  { %v475_v7 = vpack.c.bf16 %v460_v4, %v459_v3  ;;  %v413_v10 = vadd.f32 %v1091_v58, %v412_v6  ;;  %v465_v20 = vmax.f32 %v421_v12, 0.0 }
 0x207   :  { %v1269_v9 = vpop.f32.mrf.mxu1 }
 0x208   :  { %v424_v11 = vadd.f32 %v1269_v9, %v1091_v58  ;;  %1294 = vmatprep.mubr.bf16.mxu0 %v475_v7  ;;  %v463_v18 = vmax.f32 %v413_v10, 0.0 }
 0x209   :  { %v415_v13 = vpop.f32.mrf.mxu1  ;;  %1295 = vmatmul.mubr.bf16.vlgmr.msra.gmra.mxu0 %v476_v8 }
 0x20a   :  { %v416_v14 = vadd.f32 %v1091_v58, %v415_v13  ;;  %v466_v15 = vmax.f32 %v424_v11, 0.0  ;;  %1343 = vmatpush3.bf16.msra.mxu0 %v1442_v57 }
 0x20b   :  { %v1272_v17 = vpop.f32.mrf.mxu1  ;;  %1344 = vmatprep.subr.bf16.mxu0 %v1443_v59 }
 0x20c   :  { %v464_v19 = vmax.f32 %v416_v14, 0.0  ;;  %v478_v23 = vpack.c.bf16 %v466_v15, %v465_v20  ;;  %v437_v27 = vadd.f32 %v1272_v17, %v1091_v58 }
 0x20d   :  { %v428_v21 = vpop.f32.mrf.mxu1 }
 0x20e   :  { %v477_v22 = vpack.c.bf16 %v464_v19, %v463_v18  ;;  %v429_v25 = vadd.f32 %v1091_v58, %v428_v21  ;;  %v469_v34 = vmax.f32 %v437_v27, 0.0  ;;  %1345 = vmatpush3.bf16.msra.mxu0 %v1443_v59 }
 0x20f   :  { %v1273_v24 = vpop.f32.mrf.mxu1  ;;  %1346 = vmatprep.subr.bf16.mxu0 %v1444_v60 }
 0x210   :  { %v440_v26 = vadd.f32 %v1273_v24, %v1091_v58  ;;  %1298 = vmatprep.mubr.bf16.mxu0 %v477_v22  ;;  %v467_v32 = vmax.f32 %v429_v25, 0.0  ;;  %v1448_v24 = vld [vmem:[#allocation4 + $0x8] sm:$0xff]   ;;  %v1449_v25 = vld [vmem:[#allocation4] sm:$0xff]  }
 0x211   :  { %v431_v28 = vpop.f32.mrf.mxu1  ;;  %1299 = vmatmul.mubr.bf16.gmra.mxu0 %v478_v23  ;;  %v1447_v23 = vld [vmem:[#allocation4 + $0x10] sm:$0xff]  }
 0x212   :  { %v432_v29 = vadd.f32 %v1091_v58, %v431_v28  ;;  %v470_v30 = vmax.f32 %v440_v26, 0.0  ;;  %1347 = vmatpush3.bf16.msra.mxu0 %v1444_v60  ;;  %v1108_v28 = vld [vmem:[%s1723_s5] ss:$0 sm:$0xff] }
 0x213   :  { %v1276_v31 = vpop.f32.mrf.mxu1  ;;  %1348 = vmatprep.subr.bf16.mxu0 %v1445_v61 }
 0x214   :  { %v468_v33 = vmax.f32 %v432_v29, 0.0  ;;  %v480_v37 = vpack.c.bf16 %v470_v30, %v469_v34  ;;  %v453_v41 = vadd.f32 %v1276_v31, %v1091_v58 }
 0x215   :  { %v444_v35 = vpop.f32.mrf.mxu1 }
 0x216   :  { %v479_v36 = vpack.c.bf16 %v468_v33, %v467_v32  ;;  %v445_v39 = vadd.f32 %v1091_v58, %v444_v35  ;;  %v473_v54 = vmax.f32 %v453_v41, 0.0  ;;  %1349 = vmatpush3.bf16.msra.mxu0 %v1445_v61 }
 0x217   :  { %v1277_v38 = vpop.f32.mrf.mxu1 }
 0x218   :  { %v456_v40 = vadd.f32 %v1277_v38, %v1091_v58  ;;  %1302 = vmatprep.mubr.bf16.mxu0 %v479_v36  ;;  %v471_v45 = vmax.f32 %v445_v39, 0.0 }
 0x219   :  { %v447_v42 = vpop.f32.mrf.mxu1  ;;  %1303 = vmatmul.mubr.bf16.gmra.mxu0 %v480_v37 }
 0x21a   :  { %v448_v43 = vadd.f32 %v1091_v58, %v447_v42  ;;  %v474_v44 = vmax.f32 %v456_v40, 0.0  ;;  %v1446_v58 = vld [vmem:[#allocation4 + $0x18] sm:$0xff]  }
 0x21b   :  { %1350 = vmatprep.subr.bf16.mxu0 %v1446_v58 }
 0x21c   :  { %v472_v53 = vmax.f32 %v448_v43, 0.0  ;;  %v482_v56 = vpack.c.bf16 %v474_v44, %v473_v54  ;;  %1351 = vmatpush3.bf16.msra.mxu0 %v1446_v58 }
 0x21d   :  { %1352 = vmatprep.subr.bf16.mxu0 %v1447_v23 }
 0x21e   :  { %v481_v55 = vpack.c.bf16 %v472_v53, %v471_v45 }
 0x220   :  { %1306 = vmatprep.mubr.bf16.mxu0 %v481_v55  ;;  %1353 = vmatpush3.bf16.msra.mxu0 %v1447_v23 }
 0x221   :  { %1307 = vmatmul.mubr.bf16.gmra.mxu0 %v482_v56  ;;  %1354 = vmatprep.subr.bf16.mxu0 %v1448_v24 }
 0x224   :  { %1355 = vmatpush3.bf16.msra.mxu0 %v1448_v24 }
 0x225   :  { %1356 = vmatprep.subr.bf16.mxu0 %v1449_v25 }
 0x228   :  { %1357 = vmatpush3.bf16.msra.mxu0 %v1449_v25 }
 0x2c9   :  { %v1296_v62 = vpop.f32.mrf.mxu0 }
 0x2cb   :  { %v581_v63 = vpop.f32.mrf.mxu0 }
 0x2cd   :  { %v1297_v0 = vpop.f32.mrf.mxu0 }
 0x2ce   :  { %v645_v21 = vpack.c.bf16 %v1297_v0, %v1296_v62 }
 0x2cf   :  { %v584_v1 = vpop.f32.mrf.mxu0 }
 0x2d0   :  { %v644_v22 = vpack.c.bf16 %v584_v1, %v581_v63 }
 0x2d1   :  { %v1300_v2 = vpop.f32.mrf.mxu0 }
 0x2d3   :  { %v597_v3 = vpop.f32.mrf.mxu0 }
 0x2d5   :  { %v1301_v4 = vpop.f32.mrf.mxu0 }
 0x2d6   :  { %v647_v19 = vpack.c.bf16 %v1301_v4, %v1300_v2 }
 0x2d7   :  { %v600_v5 = vpop.f32.mrf.mxu0 }
 0x2d8   :  { %v646_v20 = vpack.c.bf16 %v600_v5, %v597_v3 }
 0x2d9   :  { %v1304_v6 = vpop.f32.mrf.mxu0 }
 0x2db   :  { %v613_v7 = vpop.f32.mrf.mxu0 }
 0x2dd   :  { %v1305_v8 = vpop.f32.mrf.mxu0 }
 0x2de   :  { %v649_v17 = vpack.c.bf16 %v1305_v8, %v1304_v6 }
 0x2df   :  { %v616_v9 = vpop.f32.mrf.mxu0 }
 0x2e0   :  { %v648_v18 = vpack.c.bf16 %v616_v9, %v613_v7 }
 0x2e1   :  { %v1308_v10 = vpop.f32.mrf.mxu0 }
 0x2e3   :  { %v629_v11 = vpop.f32.mrf.mxu0 }
 0x2e5   :  { %v1309_v12 = vpop.f32.mrf.mxu0 }
 0x2e6   :  { %v651_v13 = vpack.c.bf16 %v1309_v12, %v1308_v10 }
 0x2e7   :  { %v632_v14 = vpop.f32.mrf.mxu0 }
 0x2e8   :  { %v650_v15 = vpack.c.bf16 %v632_v14, %v629_v11  ;;  %1310 = vmatprep.subr.bf16.mxu1 %v651_v13 }
 0x2e9   :  { %1311 = vmatpush3.bf16.msra.mxu1 %v651_v13 }
 0x2ea   :  { %1312 = vmatprep.subr.bf16.mxu1 %v650_v15 }
 0x2ed   :  { %1313 = vmatpush3.bf16.msra.mxu1 %v650_v15 }
 0x2ee   :  { %1314 = vmatprep.subr.bf16.mxu1 %v649_v17 }
 0x2f1   :  { %1315 = vmatpush3.bf16.msra.mxu1 %v649_v17 }
 0x2f2   :  { %1316 = vmatprep.subr.bf16.mxu1 %v648_v18 }
 0x2f5   :  { %1317 = vmatpush3.bf16.msra.mxu1 %v648_v18 }
 0x2f6   :  { %1318 = vmatprep.subr.bf16.mxu1 %v647_v19 }
 0x2f9   :  { %1319 = vmatpush3.bf16.msra.mxu1 %v647_v19 }
 0x2fa   :  { %1320 = vmatprep.subr.bf16.mxu1 %v646_v20 }
 0x2fd   :  { %1321 = vmatpush3.bf16.msra.mxu1 %v646_v20 }
 0x2fe   :  { %1322 = vmatprep.subr.bf16.mxu1 %v645_v21 }
 0x301   :  { %1323 = vmatpush3.bf16.msra.mxu1 %v645_v21 }
 0x302   :  { %1324 = vmatprep.subr.bf16.mxu1 %v644_v22 }
 0x305   :  { %1325 = vmatpush3.bf16.msra.mxu1 %v644_v22 }
 0x308   :  { %1327 = vmatmul.mubr.bf16.vlgmr.msra.gmra.mxu1 %v1606_v46 }
 0x309   :  { %1330 = vmatprep.mubr.bf16.mxu1 %v1611_v47 }
 0x310   :  { %1331 = vmatmul.mubr.bf16.gmra.mxu1 %v1618_v48 }
 0x311   :  { %1334 = vmatprep.mubr.bf16.mxu1 %v1623_v49 }
 0x318   :  { %1335 = vmatmul.mubr.bf16.gmra.mxu1 %v1630_v50 }
 0x319   :  { %1338 = vmatprep.mubr.bf16.mxu1 %v1635_v51 }
 0x320   :  { %1339 = vmatmul.mubr.bf16.gmra.mxu1 %v1642_v52 }
 0x321   :  { %1390 = vmatprep.mubr.bf16.mxu1 %v1600_v16 }
 0x3c8   :  { %v1328_v26 = vpop.f32.mrf.mxu1 }
 0x3c9   :  { %v702_v32 = vadd.f32 %v1328_v26, %v1108_v28 }
 0x3ca   :  { %v693_v27 = vpop.f32.mrf.mxu1 }
 0x3cb   :  { %v694_v30 = vadd.f32 %v1108_v28, %v693_v27  ;;  %v758_v38 = vmax.f32 %v702_v32, 0.0 }
 0x3cc   :  { %v1329_v29 = vpop.f32.mrf.mxu1 }
 0x3cd   :  { %v705_v31 = vadd.f32 %v1329_v29, %v1108_v28  ;;  %v756_v36 = vmax.f32 %v694_v30, 0.0 }
 0x3ce   :  { %v696_v16 = vpop.f32.mrf.mxu1 }
 0x3cf   :  { %v697_v33 = vadd.f32 %v1108_v28, %v696_v16  ;;  %v759_v34 = vmax.f32 %v705_v31, 0.0 }
 0x3d0   :  { %v1332_v35 = vpop.f32.mrf.mxu1 }
 0x3d1   :  { %v757_v37 = vmax.f32 %v697_v33, 0.0  ;;  %v773_v41 = vpack.c.bf16 %v759_v34, %v758_v38  ;;  %v718_v45 = vadd.f32 %v1332_v35, %v1108_v28 }
 0x3d2   :  { %v709_v39 = vpop.f32.mrf.mxu1 }
 0x3d3   :  { %v772_v40 = vpack.c.bf16 %v757_v37, %v756_v36  ;;  %v710_v43 = vadd.f32 %v1108_v28, %v709_v39  ;;  %v762_v60 = vmax.f32 %v718_v45, 0.0 }
 0x3d4   :  { %v1333_v42 = vpop.f32.mrf.mxu1 }
 0x3d5   :  { %v721_v44 = vadd.f32 %v1333_v42, %v1108_v28  ;;  %1358 = vmatprep.mubr.bf16.mxu0 %v772_v40  ;;  %v760_v57 = vmax.f32 %v710_v43, 0.0 }
 0x3d6   :  { %v712_v53 = vpop.f32.mrf.mxu1  ;;  %1359 = vmatmul.mubr.bf16.vlgmr.msra.gmra.mxu0 %v773_v41 }
 0x3d7   :  { %v713_v54 = vadd.f32 %v1108_v28, %v712_v53  ;;  %v763_v55 = vmax.f32 %v721_v44, 0.0 }
 0x3d8   :  { %v1336_v56 = vpop.f32.mrf.mxu1 }
 0x3d9   :  { %v761_v59 = vmax.f32 %v713_v54, 0.0  ;;  %v775_v62 = vpack.c.bf16 %v763_v55, %v762_v60  ;;  %v734_v2 = vadd.f32 %v1336_v56, %v1108_v28  ;;  %v1117_v56 = vld [vmem:[%s1725_s7] ss:$0 sm:$0xff] }
 0x3da   :  { %v725_v61 = vpop.f32.mrf.mxu1 }
 0x3db   :  { %v774_v58 = vpack.c.bf16 %v761_v59, %v760_v57  ;;  %v726_v0 = vadd.f32 %v1108_v28, %v725_v61  ;;  %v766_v9 = vmax.f32 %v734_v2, 0.0 }
 0x3dc   :  { %v1337_v63 = vpop.f32.mrf.mxu1 }
 0x3dd   :  { %v737_v1 = vadd.f32 %v1337_v63, %v1108_v28  ;;  %1362 = vmatprep.mubr.bf16.mxu0 %v774_v58  ;;  %v764_v7 = vmax.f32 %v726_v0, 0.0 }
 0x3de   :  { %v728_v3 = vpop.f32.mrf.mxu1  ;;  %1363 = vmatmul.mubr.bf16.gmra.mxu0 %v775_v62 }
 0x3df   :  { %v729_v4 = vadd.f32 %v1108_v28, %v728_v3  ;;  %v767_v5 = vmax.f32 %v737_v1, 0.0 }
 0x3e0   :  { %v1340_v6 = vpop.f32.mrf.mxu1 }
 0x3e1   :  { %v765_v8 = vmax.f32 %v729_v4, 0.0  ;;  %v777_v12 = vpack.c.bf16 %v767_v5, %v766_v9  ;;  %v750_v17 = vadd.f32 %v1340_v6, %v1108_v28 }
 0x3e2   :  { %v741_v10 = vpop.f32.mrf.mxu1 }
 0x3e3   :  { %v776_v11 = vpack.c.bf16 %v765_v8, %v764_v7  ;;  %v742_v14 = vadd.f32 %v1108_v28, %v741_v10  ;;  %v770_v23 = vmax.f32 %v750_v17, 0.0 }
 0x3e4   :  { %v1341_v13 = vpop.f32.mrf.mxu1 }
 0x3e5   :  { %v753_v15 = vadd.f32 %v1341_v13, %v1108_v28  ;;  %1366 = vmatprep.mubr.bf16.mxu0 %v776_v11  ;;  %v768_v21 = vmax.f32 %v742_v14, 0.0 }
 0x3e6   :  { %v744_v18 = vpop.f32.mrf.mxu1  ;;  %1367 = vmatmul.mubr.bf16.gmra.mxu0 %v777_v12 }
 0x3e7   :  { %v745_v19 = vadd.f32 %v1108_v28, %v744_v18  ;;  %v771_v20 = vmax.f32 %v753_v15, 0.0 }
 0x3e9   :  { %v769_v22 = vmax.f32 %v745_v19, 0.0  ;;  %v779_v25 = vpack.c.bf16 %v771_v20, %v770_v23 }
 0x3eb   :  { %v778_v24 = vpack.c.bf16 %v769_v22, %v768_v21 }
 0x3ed   :  { %1370 = vmatprep.mubr.bf16.mxu0 %v778_v24 }
 0x3ee   :  { %1371 = vmatmul.mubr.bf16.gmra.mxu0 %v779_v25 }
 0x496   :  { %v1360_v26 = vpop.f32.mrf.mxu0 }
 0x498   :  { %v878_v27 = vpop.f32.mrf.mxu0 }
 0x49a   :  { %v1361_v29 = vpop.f32.mrf.mxu0 }
 0x49b   :  { %v942_v54 = vpack.c.bf16 %v1361_v29, %v1360_v26 }
 0x49c   :  { %v881_v30 = vpop.f32.mrf.mxu0 }
 0x49d   :  { %v941_v55 = vpack.c.bf16 %v881_v30, %v878_v27 }
 0x49e   :  { %v1364_v31 = vpop.f32.mrf.mxu0 }
 0x4a0   :  { %v894_v32 = vpop.f32.mrf.mxu0 }
 0x4a2   :  { %v1365_v16 = vpop.f32.mrf.mxu0 }
 0x4a3   :  { %v944_v45 = vpack.c.bf16 %v1365_v16, %v1364_v31 }
 0x4a4   :  { %v897_v33 = vpop.f32.mrf.mxu0 }
 0x4a5   :  { %v943_v53 = vpack.c.bf16 %v897_v33, %v894_v32 }
 0x4a6   :  { %v1368_v34 = vpop.f32.mrf.mxu0 }
 0x4a8   :  { %v910_v35 = vpop.f32.mrf.mxu0 }
 0x4aa   :  { %v1369_v36 = vpop.f32.mrf.mxu0 }
 0x4ab   :  { %v946_v43 = vpack.c.bf16 %v1369_v36, %v1368_v34 }
 0x4ac   :  { %v913_v28 = vpop.f32.mrf.mxu0 }
 0x4ad   :  { %v945_v44 = vpack.c.bf16 %v913_v28, %v910_v35 }
 0x4ae   :  { %v1372_v37 = vpop.f32.mrf.mxu0 }
 0x4b0   :  { %v926_v38 = vpop.f32.mrf.mxu0 }
 0x4b2   :  { %v1373_v39 = vpop.f32.mrf.mxu0 }
 0x4b3   :  { %v948_v40 = vpack.c.bf16 %v1373_v39, %v1372_v37 }
 0x4b4   :  { %v929_v41 = vpop.f32.mrf.mxu0 }
 0x4b5   :  { %v947_v42 = vpack.c.bf16 %v929_v41, %v926_v38  ;;  %1374 = vmatprep.subr.bf16.mxu1 %v948_v40 }
 0x4b6   :  { %1375 = vmatpush3.bf16.msra.mxu1 %v948_v40 }
 0x4b7   :  { %1376 = vmatprep.subr.bf16.mxu1 %v947_v42 }
 0x4ba   :  { %1377 = vmatpush3.bf16.msra.mxu1 %v947_v42 }
 0x4bb   :  { %1378 = vmatprep.subr.bf16.mxu1 %v946_v43 }
 0x4be   :  { %1379 = vmatpush3.bf16.msra.mxu1 %v946_v43 }
 0x4bf   :  { %1380 = vmatprep.subr.bf16.mxu1 %v945_v44 }
 0x4c2   :  { %1381 = vmatpush3.bf16.msra.mxu1 %v945_v44 }
 0x4c3   :  { %1382 = vmatprep.subr.bf16.mxu1 %v944_v45 }
 0x4c6   :  { %1383 = vmatpush3.bf16.msra.mxu1 %v944_v45 }
 0x4c7   :  { %1384 = vmatprep.subr.bf16.mxu1 %v943_v53 }
 0x4ca   :  { %1385 = vmatpush3.bf16.msra.mxu1 %v943_v53 }
 0x4cb   :  { %1386 = vmatprep.subr.bf16.mxu1 %v942_v54 }
 0x4ce   :  { %1387 = vmatpush3.bf16.msra.mxu1 %v942_v54 }
 0x4cf   :  { %1388 = vmatprep.subr.bf16.mxu1 %v941_v55 }
 0x4d2   :  { %1389 = vmatpush3.bf16.msra.mxu1 %v941_v55 }
 0x4d5   :  { %1391 = vmatmul.mubr.bf16.vlgmr.msra.gmra.mxu1 %v1606_v46 }
 0x4d6   :  { %1394 = vmatprep.mubr.bf16.mxu1 %v1611_v47 }
 0x4dd   :  { %1395 = vmatmul.mubr.bf16.gmra.mxu1 %v1618_v48 }
 0x4de   :  { %1398 = vmatprep.mubr.bf16.mxu1 %v1623_v49 }
 0x4e5   :  { %1399 = vmatmul.mubr.bf16.gmra.mxu1 %v1630_v50 }
 0x4e6   :  { %1402 = vmatprep.mubr.bf16.mxu1 %v1635_v51 }
 0x4ed   :  { %1403 = vmatmul.mubr.bf16.gmra.mxu1 %v1642_v52 }
 0x595   :  { %v1392_v57 = vpop.f32.mrf.mxu1 }
 0x596   :  { %v999_v59 = vadd.f32 %v1392_v57, %v1117_v56 }
 0x597   :  { %v990_v60 = vpop.f32.mrf.mxu1 }
 0x598   :  { %1055 = vst [vmem:[%s1726_s8 + $0x10] sm:$0xff] %v999_v59  ;;  %v991_v46 = vadd.f32 %v1117_v56, %v990_v60 }
 0x599   :  { %v1393_v47 = vpop.f32.mrf.mxu1 }
 0x59a   :  { %1053 = vst [vmem:[%s1726_s8] sm:$0xff] %v991_v46  ;;  %v1002_v48 = vadd.f32 %v1393_v47, %v1117_v56 }
 0x59b   :  { %v993_v49 = vpop.f32.mrf.mxu1 }
 0x59c   :  { %1056 = vst [vmem:[%s1726_s8 + $0x18] sm:$0xff] %v1002_v48  ;;  %v994_v50 = vadd.f32 %v1117_v56, %v993_v49 }
 0x59d   :  { %v1396_v51 = vpop.f32.mrf.mxu1 }
 0x59e   :  { %1054 = vst [vmem:[%s1726_s8 + $0x8] sm:$0xff] %v994_v50  ;;  %v1015_v52 = vadd.f32 %v1396_v51, %v1117_v56 }
 0x59f   :  { %v1006_v61 = vpop.f32.mrf.mxu1 }
 0x5a0   :  { %1059 = vst [vmem:[%s1726_s8 + $0x30] sm:$0xff] %v1015_v52  ;;  %v1007_v58 = vadd.f32 %v1117_v56, %v1006_v61 }
 0x5a1   :  { %v1397_v62 = vpop.f32.mrf.mxu1 }
 0x5a2   :  { %1057 = vst [vmem:[%s1726_s8 + $0x20] sm:$0xff] %v1007_v58  ;;  %v1018_v63 = vadd.f32 %v1397_v62, %v1117_v56 }
 0x5a3   :  { %v1009_v0 = vpop.f32.mrf.mxu1 }
 0x5a4   :  { %1060 = vst [vmem:[%s1726_s8 + $0x38] sm:$0xff] %v1018_v63  ;;  %v1010_v1 = vadd.f32 %v1117_v56, %v1009_v0 }
 0x5a5   :  { %v1400_v2 = vpop.f32.mrf.mxu1 }
 0x5a6   :  { %1058 = vst [vmem:[%s1726_s8 + $0x28] sm:$0xff] %v1010_v1  ;;  %v1031_v3 = vadd.f32 %v1400_v2, %v1117_v56 }
 0x5a7   :  { %v1022_v4 = vpop.f32.mrf.mxu1 }
 0x5a8   :  { %1063 = vst [vmem:[%s1726_s8 + $0x50] sm:$0xff] %v1031_v3  ;;  %v1023_v5 = vadd.f32 %v1117_v56, %v1022_v4 }
 0x5a9   :  { %v1401_v6 = vpop.f32.mrf.mxu1 }
 0x5aa   :  { %1061 = vst [vmem:[%s1726_s8 + $0x40] sm:$0xff] %v1023_v5  ;;  %v1034_v7 = vadd.f32 %v1401_v6, %v1117_v56 }
 0x5ab   :  { %v1025_v8 = vpop.f32.mrf.mxu1 }
 0x5ac   :  { %1064 = vst [vmem:[%s1726_s8 + $0x58] sm:$0xff] %v1034_v7  ;;  %v1026_v9 = vadd.f32 %v1117_v56, %v1025_v8 }
 0x5ad   :  { %v1404_v10 = vpop.f32.mrf.mxu1 }
 0x5ae   :  { %1062 = vst [vmem:[%s1726_s8 + $0x48] sm:$0xff] %v1026_v9  ;;  %v1047_v11 = vadd.f32 %v1404_v10, %v1117_v56 }
 0x5af   :  { %v1038_v12 = vpop.f32.mrf.mxu1 }
 0x5b0   :  { %1067 = vst [vmem:[%s1726_s8 + $0x70] sm:$0xff] %v1047_v11  ;;  %v1039_v13 = vadd.f32 %v1117_v56, %v1038_v12 }
 0x5b1   :  { %v1405_v14 = vpop.f32.mrf.mxu1 }
 0x5b2   :  { %1065 = vst [vmem:[%s1726_s8 + $0x60] sm:$0xff] %v1039_v13  ;;  %v1050_v15 = vadd.f32 %v1405_v14, %v1117_v56 }
 0x5b3   :  { %v1041_v17 = vpop.f32.mrf.mxu1 }
 0x5b4   :  { %1068 = vst [vmem:[%s1726_s8 + $0x78] sm:$0xff] %v1050_v15  ;;  %v1042_v18 = vadd.f32 %v1117_v56, %v1041_v17 }
 0x5b6   :  { %1066 = vst [vmem:[%s1726_s8 + $0x68] sm:$0xff] %v1042_v18 }
 0x5b7   :  { %1073 = vsyncpa [#allocation3], 1 }
 0x5b8   :  { %1074 = vsyncpa [#allocation5], 1 }

</bundles_post_ra>
